<compile_context>
chip_gen: v6e
topology: v6e:2x2x1
jax: 0.10.0
libtpu: 0.0.40
codegen_flags: <defaults>
</compile_context>

<pallas_src>
from functools import partial

import numpy as np
import jax
import jax.numpy as jnp
from jax.experimental import pallas as pl
from jax.experimental.pallas import tpu as pltpu


def _routing_kernel(x_ref, w_ref, out_ref):
    """One batch block per grid step.

    x_ref  : (TB, in_n*D)        flattened current poses (lane-dense)
    w_ref  : (in_n*D, out_n*D)   fused pose-transform + uniform-routing matrix
    out_ref: (TB, out_n*D)       f32 output (accumulation stays in f32)
    """
    out_ref[...] = jnp.dot(
        x_ref[...], w_ref[...], preferred_element_type=jnp.float32
    ).astype(out_ref.dtype)


def build_routing_matrix(w_current, w_next):
    """Fold both per-capsule pose transforms and the constant-softmax routing
    (uniform 1/out_n) into a single (in_n*D, out_n*D) matrix.  Depends only on the
    weights -> build once per weight update and reuse across forwards."""
    k1, k2, in_n, m, _ = w_current.shape
    out_n = w_next.shape[0]
    n_in = k1 * k2 * in_n
    wc = w_current.reshape(n_in, m, m).astype(jnp.float32)
    wn = w_next.astype(jnp.float32)
    # w4[j,k,i,c] = (1/out_n) * sum_l wc[j,k,l] * wn[i,l,c]
    w4 = jnp.einsum('jkl,ilc->jkic', wc, wn) / out_n            # (n_in, m, out_n, m)
    eye_m = jnp.eye(m, dtype=w4.dtype)
    # W[(j,r,k),(i,s,c)] = delta(r,s) * w4[j,k,i,c]   (block-diagonal in pose-row r)
    W = jnp.einsum('jkic,rs->jrkisc', w4, eye_m).reshape(n_in * m * m, out_n * m * m)
    return W


@partial(jax.jit, static_argnames=("block_b", "compute_dtype"))
def bilinear_sparse_routing_forward(current_pose, w_current, w_next, *,
                                    block_b=1024, compute_dtype=jnp.bfloat16):
    """FC-layer forward of BilinearSparseRouting (matrix_pose=True, next_pose=None).

    current_pose: (B, k*k*in_n, pose_dim) float32
    w_current   : (k, k, in_n, m, m) float32   (m = sqrt(pose_dim))
    w_next      : (out_n, m, m) float32
    returns     : (B, 1, out_n, pose_dim) float32  -- matches PyTorch FC output shape
    """
    B, N_in, D = current_pose.shape
    m = int(np.sqrt(D))
    assert m * m == D, "matrix_pose requires pose_dim to be a perfect square"
    out_n = w_next.shape[0]
    row_dim = N_in * D      # 128 for the default config -> lane-dense
    col_dim = out_n * D     # 128 for the default config -> lane-dense unmasked stores

    # Fused weight matrix (cacheable); cast the MXU operands to the compute dtype
    # (bf16 by default: halves HBM traffic, MXU-native on v5e/v6e/v7x).
    W = build_routing_matrix(w_current, w_next).astype(compute_dtype)
    x = current_pose.reshape(B, row_dim).astype(compute_dtype)

    # ---- batch tiling ------------------------------------------------------
    #  * B <= 8: single full-extent block (allowed by the (8,128) rule).
    #  * otherwise: sublane-aligned tile, capped at ceil(B/2) so the grid has
    #    >= 2 "parallel" steps and both v7x TensorCores are used; no padding --
    #    the ragged last block is masked by Pallas and tail rows are independent.
    if B <= 8:
        TB = B
    else:
        half_aligned = (((B + 1) // 2 + 7) // 8) * 8
        TB = max(8, (min(block_b, half_aligned) // 8) * 8)
    n_blocks = pl.cdiv(B, TB)

    itemsize = jnp.dtype(compute_dtype).itemsize
    cost = pl.CostEstimate(
        flops=2 * B * row_dim * col_dim,
        transcendentals=0,
        bytes_accessed=(B * row_dim + row_dim * col_dim) * itemsize + B * col_dim * 4,
    )

    out = pl.pallas_call(
        _routing_kernel,
        out_shape=jax.ShapeDtypeStruct((B, col_dim), jnp.float32),
        grid_spec=pltpu.PrefetchScalarGridSpec(
            num_scalar_prefetch=0,
            grid=(n_blocks,),
            in_specs=[
                pl.BlockSpec((TB, row_dim), lambda b: (b, 0)),
                # W is tiny (<=64 KiB here) and grid-invariant: constant index_map
                # means its DMA is issued once and the block stays VMEM-resident.
                pl.BlockSpec((row_dim, col_dim), lambda b: (0, 0)),
            ],
            out_specs=pl.BlockSpec((TB, col_dim), lambda b: (b, 0)),
        ),
        compiler_params=pltpu.CompilerParams(dimension_semantics=("parallel",)),
        cost_estimate=cost,
    )(x, W)

    # PyTorch FC path: .view(B, 1, 1, out_n, D).squeeze(1) -> (B, 1, out_n, D)
    return out.reshape(B, 1, out_n, D)


def reference_forward(current_pose, w_current, w_next):
    """Pure-JAX mirror of the PyTorch forward (next_pose=None, FC, matrix_pose)."""
    B, N_in, D = current_pose.shape
    m = int(np.sqrt(D))
    out_n = w_next.shape[0]
    cp = current_pose.reshape(B, N_in, m, m)
    wc = w_current.reshape(N_in, m, m)
    cpp = jnp.einsum('bjrk,jkc->bjrc', cp, wc).reshape(B, N_in, D)
    dots = jax.nn.softmax(jnp.full((B, out_n, N_in), D ** (-0.5), jnp.float32), axis=-2)
    npc = jnp.einsum('bij,bje->bie', dots, cpp).reshape(B, out_n, m, m)
    out = jnp.einsum('birk,ikc->birc', npc, w_next).reshape(B, out_n, D)
    return out.reshape(B, 1, out_n, D)


if __name__ == "__main__":
    # Config matching:
    # BilinearSparseRouting(next_bucket_size=8, in_n_capsules=8, in_d_capsules=16,
    #                       out_n_capsules=8, out_d_capsules=16,
    #                       matrix_pose=True, layer_type='FC')  -> kernel_size = 1
    batch = 2
    in_n, out_n, pose_dim = 8, 8, 16
    m = int(np.sqrt(pose_dim))
    kernel_size = 1  # forced for layer_type == 'FC'

    key = jax.random.PRNGKey(0)
    k1, k2, k3 = jax.random.split(key, 3)
    # parameters initialized deterministically, same distribution as the module (0.02 * randn)
    w_current = 0.02 * jax.random.normal(
        k1, (kernel_size, kernel_size, in_n, m, m), jnp.float32)
    w_next = 0.02 * jax.random.normal(k2, (out_n, m, m), jnp.float32)
    current_pose = jax.random.normal(
        k3, (batch, kernel_size * kernel_size * in_n, pose_dim), jnp.float32)

    # Default (bf16 MXU operands, f32 accumulation/output).
    out_bf16 = jax.block_until_ready(
        bilinear_sparse_routing_forward(current_pose, w_current, w_next))
    # Full-precision path for a tight numerical check.
    out_f32 = jax.block_until_ready(
        bilinear_sparse_routing_forward(current_pose, w_current, w_next,
                                        compute_dtype=jnp.float32))

    ref = reference_forward(current_pose, w_current, w_next)
    np.testing.assert_allclose(np.asarray(out_f32), np.asarray(ref), rtol=1e-5, atol=1e-5)
    np.testing.assert_allclose(np.asarray(out_bf16), np.asarray(ref), rtol=3e-2, atol=1e-3)

    print("KERNEL_OK")
</pallas_src>

<mosaic_0001>
module attributes {stable_mosaic.version = 11 : i64} {
  func.func @_routing_kernel(%arg0: i32, %arg1: memref<2x128xbf16, #tpu.memory_space<vmem>>, %arg2: memref<128x128xbf16, #tpu.memory_space<vmem>>, %arg3: memref<2x128xf32, #tpu.memory_space<vmem>>) attributes {dimension_semantics = [#tpu.dimension_semantics<parallel>], iteration_bounds = array<i64: 1>, scalar_prefetch = 0 : i64, scratch_operands = 0 : i64, tpu.core_type = #tpu.core_type<tc>, window_params = [{transform_indices = @transform_0, window_bounds = array<i64: 2, 128>}, {pipeline_mode = #tpu.pipeline_mode<synchronous>, transform_indices = @transform_1, window_bounds = array<i64: 128, 128>}, {transform_indices = @transform_2, window_bounds = array<i64: 2, 128>}]} {
    %c0 = arith.constant 0 : index
    %c0_0 = arith.constant 0 : index
    %0 = vector.load %arg1[%c0, %c0_0] : memref<2x128xbf16, #tpu.memory_space<vmem>>, vector<2x128xbf16>
    %c0_1 = arith.constant 0 : index
    %c0_2 = arith.constant 0 : index
    %1 = vector.load %arg2[%c0_1, %c0_2] : memref<128x128xbf16, #tpu.memory_space<vmem>>, vector<128x128xbf16>
    %cst = arith.constant dense<0.000000e+00> : vector<2x128xf32>
    %2 = tpu.matmul %0, %1, %cst {dimension_numbers = #tpu.dot_dimension_numbers<[1], [0], [0], [1], [0, 0, 1, 1], [], []>} : vector<2x128xbf16>, vector<128x128xbf16>, vector<2x128xf32> -> vector<2x128xf32>
    %c0_3 = arith.constant 0 : index
    %c0_4 = arith.constant 0 : index
    %3 = vector.load %arg3[%c0_3, %c0_4] : memref<2x128xf32, #tpu.memory_space<vmem>>, vector<2x128xf32>
    tpu.vector_store %arg3[%c0_3, %c0_4], %2 {strides = array<i32>} : memref<2x128xf32, #tpu.memory_space<vmem>>, vector<2x128xf32>,
    return
  }
  func.func @transform_0(%arg0: i32) -> (i32, i32) {
    %c0_i32 = arith.constant 0 : i32
    %c0_i32_0 = arith.constant 0 : i32
    return %arg0, %c0_i32 : i32, i32
  }
  func.func @transform_1(%arg0: i32) -> (i32, i32) {
    %c0_i32 = arith.constant 0 : i32
    %c0_i32_0 = arith.constant 0 : i32
    %c0_i32_1 = arith.constant 0 : i32
    return %c0_i32, %c0_i32_0 : i32, i32
  }
  func.func @transform_2(%arg0: i32) -> (i32, i32) {
    %c0_i32 = arith.constant 0 : i32
    %c0_i32_0 = arith.constant 0 : i32
    return %arg0, %c0_i32 : i32, i32
  }
}

</mosaic_0001>

<bundles_post_ra>
// kernel: bilinear_sparse_routing_forward.1
= control target key start
LH: loop header
LB: loop body
LE: loop exit
PB: predicated region body
PF: predicated region fallthrough
CT: control target
= control target key end

     0   :  { %v169_v0 = vmov 0.0   ;;  %vm170_vm0 = vmmov 0   ;;  %s216_s1 = inlined_call_operand.vmem [shape: bf16[128,128], index: 1, kind: input, shape index: {}]   ;;  %s217_s0 = inlined_call_operand.vmem [shape: bf16[2,128], index: 0, kind: input, shape index: {}]   ;;  %s218_s2 = inlined_call_operand.vmem [shape: f32[2,128], index: 2, kind: output, shape index: {}]  }
   0x1   :  { %139 = vmatprep.subr.bf16.mxu0 %v169_v0  ;;  %v161_v1 = vld [vmem:[%s216_s1 + $0x38] sm:$0xff]   ;;  %155 = vmatprep.mubr.msk.bf16.mxu0 %vm170_vm0, %v169_v0  ;;  %v162_v2 = vld [vmem:[%s216_s1 + $0x30] sm:$0xff]   ;;  %v163_v3 = vld [vmem:[%s216_s1 + $0x28] sm:$0xff]  }
   0x2   :  { %140 = vmatpush3.bf16.msra.mxu0 %v161_v1  ;;  %v164_v4 = vld [vmem:[%s216_s1 + $0x20] sm:$0xff]   ;;  %v165_v5 = vld [vmem:[%s216_s1 + $0x18] sm:$0xff]   ;;  %v166_v6 = vld [vmem:[%s216_s1 + $0x10] sm:$0xff]  }
   0x3   :  { %141 = vmatprep.subr.bf16.mxu0 %v169_v0  ;;  %v167_v7 = vld [vmem:[%s216_s1 + $0x8] sm:$0xff]   ;;  %v168_v8 = vld [vmem:[%s216_s1] sm:$0xff]  }
   0x4   :  { %v12_v9 = vld [vmem:[%s217_s0] sm:$0x1] }
   0x6   :  { %142 = vmatpush3.bf16.msra.mxu0 %v162_v2 }
   0x7   :  { %143 = vmatprep.subr.bf16.mxu0 %v169_v0 }
   0xa   :  { %144 = vmatpush3.bf16.msra.mxu0 %v163_v3 }
   0xb   :  { %145 = vmatprep.subr.bf16.mxu0 %v169_v0 }
   0xe   :  { %146 = vmatpush3.bf16.msra.mxu0 %v164_v4 }
   0xf   :  { %147 = vmatprep.subr.bf16.mxu0 %v169_v0 }
  0x12   :  { %148 = vmatpush3.bf16.msra.mxu0 %v165_v5 }
  0x13   :  { %149 = vmatprep.subr.bf16.mxu0 %v169_v0 }
  0x16   :  { %150 = vmatpush3.bf16.msra.mxu0 %v166_v6 }
  0x17   :  { %151 = vmatprep.subr.bf16.mxu0 %v169_v0 }
  0x1a   :  { %152 = vmatpush3.bf16.msra.mxu0 %v167_v7 }
  0x1b   :  { %153 = vmatprep.subr.bf16.mxu0 %v169_v0 }
  0x1e   :  { %154 = vmatpush3.bf16.msra.mxu0 %v168_v8 }
  0x21   :  { %156 = vmatmul.mubr.bf16.vlgmr.msra.gmra.mxu0 %v12_v9 }
  0xe1   :  { %v111_v10 = vpop.f32.mrf.mxu0 }
  0xe2   :  { %117 = vst [vmem:[%s218_s2] sm:$0x3] %v111_v10 }
  0xe3   :  { %v157_v11 = vpop.f32.mrf.mxu0 }
  0xe5   :  { %v114_v12 = vpop.f32.mrf.mxu0 }
  0xe7   :  { %v158_v13 = vpop.f32.mrf.mxu0 }

</bundles_post_ra>
